<compile_context>
chip_gen: v5e
topology: v5e:2x2
jax: 0.10.0
libtpu: 0.0.40
codegen_flags: <defaults>
</compile_context>

<pallas_src>
import math

import jax
import jax.numpy as jnp
from jax.experimental import pallas as pl
from jax.experimental.pallas import tpu as pltpu

LANE = 128


def _round_up(x, m):
    return (x + m - 1) // m * m


def _critic_kernel(sT_ref, aT_ref, w1T_ref, b1_ref, w2T_ref, b2_ref,
                   w3_ref, b3_ref, o_ref, x_scratch):
    """One batch tile (batch along lanes) of the critic MLP.

    sT_ref: (S, tb) bf16      aT_ref: (A, tb) bf16
    w1T_ref: (Hp, S+A) bf16   b1_ref: (Hp, 1) f32
    w2T_ref: (Hp, Hp) bf16    b2_ref: (Hp, 1) f32
    w3_ref : (Hp, 1) f32      b3_ref: (1, 1) f32
    o_ref  : (1, tb) f32      x_scratch: (S+A, tb) bf16
    """
    cdt = w1T_ref.dtype               # MXU compute dtype (bf16)
    S = sT_ref.shape[0]
    A = aT_ref.shape[0]

    # In-kernel concat along the feature (sublane) axis -> single merged fc1 dot.
    x_scratch[0:S, :] = sT_ref[...]
    x_scratch[S:S + A, :] = aT_ref[...]
    x = x_scratch[...]

    # fc1: h^T = W1^T @ x^T + b1, ReLU (bias/ReLU in f32)
    h = jnp.dot(w1T_ref[...], x, preferred_element_type=jnp.float32) + b1_ref[...]
    h = jnp.maximum(h, 0.0)
    # TODO(synk): nn.Dropout(0.1) -- identity in eval mode; training-mode RNG mask omitted.

    # fc2 + ReLU
    h = jnp.dot(w2T_ref[...], h.astype(cdt),
                preferred_element_type=jnp.float32) + b2_ref[...]
    h = jnp.maximum(h, 0.0)
    # TODO(synk): second dropout -- identity in eval mode.

    # fc3 value head: VPU multiply + sublane reduce -> lane-dense (1, tb) row.
    o_ref[...] = jnp.sum(h * w3_ref[...], axis=0, keepdims=True) + b3_ref[...]


def init_critic_params(key, state_dim, action_dim, hidden_dim):
    """PyTorch-style nn.Linear init; weights stored as (in, out) so y = x @ W + b."""
    def linear(k, fan_in, fan_out):
        kw, kb = jax.random.split(k)
        bound = 1.0 / math.sqrt(fan_in)
        w = jax.random.uniform(kw, (fan_in, fan_out), jnp.float32, -bound, bound)
        b = jax.random.uniform(kb, (1, fan_out), jnp.float32, -bound, bound)
        return w, b

    k1, k2, k3 = jax.random.split(key, 3)
    w1, b1 = linear(k1, state_dim + action_dim, hidden_dim)
    w2, b2 = linear(k2, hidden_dim, hidden_dim)
    w3, b3 = linear(k3, hidden_dim, 1)
    return (w1, b1, w2, b2, w3, b3)


def prepare_critic_params(params, state_dim, action_dim, compute_dtype=jnp.bfloat16):
    """One-time layout prep for the transposed kernel.

    Weights are stored transposed (out, in) so the kernel computes h^T = W^T @ x^T
    with batch along lanes.  The hidden dim is zero-padded to 128 so fc2 and all
    bias adds are full native tiles.  Matmul operands are cast to the MXU dtype;
    biases and the fc3 vector stay f32 (fc3 runs on the VPU, not the MXU).
    """
    w1, b1, w2, b2, w3, b3 = params
    hidden = w1.shape[1]
    h_pad = _round_up(hidden, LANE)
    hp = h_pad - hidden

    w1T = jnp.pad(w1.T, ((0, hp), (0, 0))).astype(compute_dtype)          # (Hp, S+A)
    b1c = jnp.pad(b1.reshape(-1, 1), ((0, hp), (0, 0))).astype(jnp.float32)   # (Hp, 1)
    w2T = jnp.pad(w2.T, ((0, hp), (0, hp))).astype(compute_dtype)         # (Hp, Hp)
    b2c = jnp.pad(b2.reshape(-1, 1), ((0, hp), (0, 0))).astype(jnp.float32)   # (Hp, 1)
    w3c = jnp.pad(w3, ((0, hp), (0, 0))).astype(jnp.float32)              # (Hp, 1)
    b3s = b3.reshape(1, 1).astype(jnp.float32)                            # (1, 1)
    return (w1T, b1c, w2T, b2c, w3c, b3s)


def _pick_batch_tile(B, block_b):
    """Batch lives along lanes, so the tile must be a multiple of 128."""
    b_min = _round_up(B, LANE)
    tb = _round_up(min(max(block_b, LANE), 1024), LANE)
    if b_min >= 2 * LANE:
        # Cap tb so the grid has >=2 steps: both v7x TensorCores get work.
        tb = min(tb, _round_up(b_min // 2, LANE))
    return min(tb, b_min)


def critic_forward(state, action, prepared_params, *, block_b=256):
    """state: (B, state_dim), action: (B, action_dim) -> (B, 1) float32."""
    w1T, b1, w2T, b2, w3, b3 = prepared_params
    cdt = w1T.dtype
    B, S = state.shape
    A = action.shape[1]
    Hp = w2T.shape[0]                  # padded hidden

    tb = _pick_batch_tile(B, block_b)
    b_pad = _round_up(B, tb)

    # Host-side layout plumbing (cheap XLA ops): cast activations once to the
    # MXU dtype, put the batch on the lane (last) axis, zero-pad the remainder.
    sT = jnp.pad(state.astype(cdt).T, ((0, 0), (0, b_pad - B)))
    aT = jnp.pad(action.astype(cdt).T, ((0, 0), (0, b_pad - B)))

    grid = (b_pad // tb,)

    def act_spec(rows):
        return pl.BlockSpec((rows, tb), lambda i: (0, i))

    def resident(shape):
        return pl.BlockSpec(shape, lambda i: (0, 0))

    bpe = jnp.dtype(cdt).itemsize
    weight_bytes = ((w1T.size + w2T.size) * bpe
                    + (b1.size + b2.size + w3.size + b3.size) * 4)
    tile_bytes = (2 * tb * (S + A) * bpe       # double-buffered input tiles
                  + 2 * tb * 4                 # double-buffered (1, tb) f32 output
                  + tb * (S + A) * bpe)        # concat scratch
    # Headroom below v7x's 64 MiB physical per-core VMEM.
    vmem_limit = int(min(max(4 * (weight_bytes + tile_bytes), 16 << 20), 48 << 20))

    flops = 2 * b_pad * ((S + A) * Hp + Hp * Hp + Hp)
    bytes_accessed = weight_bytes + b_pad * (S + A) * bpe + b_pad * 4

    out = pl.pallas_call(
        _critic_kernel,
        out_shape=jax.ShapeDtypeStruct((1, b_pad), jnp.float32),
        grid=grid,
        in_specs=[
            act_spec(S), act_spec(A),
            resident(w1T.shape), resident(b1.shape),
            resident(w2T.shape), resident(b2.shape),
            resident(w3.shape), resident(b3.shape),
        ],
        out_specs=pl.BlockSpec((1, tb), lambda i: (0, i)),
        scratch_shapes=[pltpu.VMEM((S + A, tb), cdt)],
        compiler_params=pltpu.CompilerParams(
            dimension_semantics=("parallel",),   # megacore sharding on v7x
            vmem_limit_bytes=vmem_limit,
        ),
        cost_estimate=pl.CostEstimate(
            flops=flops, transcendentals=0, bytes_accessed=bytes_accessed),
    )(sT, aT, w1T, b1, w2T, b2, w3, b3)

    return out[0, :B].reshape(B, 1)


def _reference_forward(state, action, params, compute_dtype=jnp.bfloat16):
    """Pure-JAX reference mirroring the kernel's math:
    bf16 operands / f32 accumulation for fc1 & fc2, f32 for the fc3 value head."""
    w1, b1, w2, b2, w3, b3 = params
    x = jnp.concatenate([state, action], axis=1).astype(compute_dtype)
    h = jnp.dot(x, w1.astype(compute_dtype), preferred_element_type=jnp.float32) + b1
    h = jnp.maximum(h, 0.0)
    h = jnp.dot(h.astype(compute_dtype), w2.astype(compute_dtype),
                preferred_element_type=jnp.float32) + b2
    h = jnp.maximum(h, 0.0)
    return jnp.dot(h, w3, preferred_element_type=jnp.float32) + b3


if __name__ == "__main__":
    key = jax.random.PRNGKey(0)
    k_s, k_a, k_p = jax.random.split(key, 3)

    # Small dims; batch deliberately not a multiple of the 128-lane tile to
    # exercise the remainder-padding path and a multi-step (grid=3) pipeline.
    batch, state_dim, action_dim, hidden_dim = 260, 16, 8, 32
    state = jax.random.normal(k_s, (batch, state_dim), jnp.float32)
    action = jax.random.normal(k_a, (batch, action_dim), jnp.float32)

    params = init_critic_params(k_p, state_dim, action_dim, hidden_dim)
    prepared = prepare_critic_params(params, state_dim, action_dim, jnp.bfloat16)

    out = critic_forward(state, action, prepared, block_b=128)
    out = jax.block_until_ready(out)

    ref = _reference_forward(state, action, params, jnp.bfloat16)
    assert out.shape == (batch, 1), out.shape
    assert jnp.allclose(out, ref, atol=1e-3, rtol=1e-3), "mismatch vs reference"

    print("KERNEL_OK")
</pallas_src>

<mosaic_0001>
module attributes {stable_mosaic.version = 11 : i64} {
  func.func @_critic_kernel(%arg0: i32, %arg1: memref<16x128xbf16, #tpu.memory_space<vmem>>, %arg2: memref<8x128xbf16, #tpu.memory_space<vmem>>, %arg3: memref<128x24xbf16, #tpu.memory_space<vmem>>, %arg4: memref<128x1xf32, #tpu.memory_space<vmem>>, %arg5: memref<128x128xbf16, #tpu.memory_space<vmem>>, %arg6: memref<128x1xf32, #tpu.memory_space<vmem>>, %arg7: memref<128x1xf32, #tpu.memory_space<vmem>>, %arg8: memref<1x1xf32, #tpu.memory_space<vmem>>, %arg9: memref<1x128xf32, #tpu.memory_space<vmem>>, %arg10: memref<24x128xbf16, #tpu.memory_space<vmem>>) attributes {dimension_semantics = [#tpu.dimension_semantics<parallel>], iteration_bounds = array<i64: 3>, scalar_prefetch = 0 : i64, scratch_operands = 1 : i64, tpu.core_type = #tpu.core_type<tc>, window_params = [{transform_indices = @transform_0, window_bounds = array<i64: 16, 128>}, {transform_indices = @transform_1, window_bounds = array<i64: 8, 128>}, {pipeline_mode = #tpu.pipeline_mode<synchronous>, transform_indices = @transform_2, window_bounds = array<i64: 128, 24>}, {pipeline_mode = #tpu.pipeline_mode<synchronous>, transform_indices = @transform_3, window_bounds = array<i64: 128, 1>}, {pipeline_mode = #tpu.pipeline_mode<synchronous>, transform_indices = @transform_4, window_bounds = array<i64: 128, 128>}, {pipeline_mode = #tpu.pipeline_mode<synchronous>, transform_indices = @transform_5, window_bounds = array<i64: 128, 1>}, {pipeline_mode = #tpu.pipeline_mode<synchronous>, transform_indices = @transform_6, window_bounds = array<i64: 128, 1>}, {pipeline_mode = #tpu.pipeline_mode<synchronous>, transform_indices = @transform_7, window_bounds = array<i64: 1, 1>}, {transform_indices = @transform_8, window_bounds = array<i64: 1, 128>}]} {
    %c0 = arith.constant 0 : index
    %c0_0 = arith.constant 0 : index
    %0 = vector.load %arg1[%c0, %c0_0] : memref<16x128xbf16, #tpu.memory_space<vmem>>, vector<16x128xbf16>
    %c0_1 = arith.constant 0 : index
    %c0_2 = arith.constant 0 : index
    %1 = vector.load %arg10[%c0_1, %c0_2] : memref<24x128xbf16, #tpu.memory_space<vmem>>, vector<16x128xbf16>
    tpu.vector_store %arg10[%c0_1, %c0_2], %0 {strides = array<i32>} : memref<24x128xbf16, #tpu.memory_space<vmem>>, vector<16x128xbf16>,
    %c0_3 = arith.constant 0 : index
    %c0_4 = arith.constant 0 : index
    %2 = vector.load %arg2[%c0_3, %c0_4] : memref<8x128xbf16, #tpu.memory_space<vmem>>, vector<8x128xbf16>
    %c16 = arith.constant 16 : index
    %c0_5 = arith.constant 0 : index
    %3 = vector.load %arg10[%c16, %c0_5] : memref<24x128xbf16, #tpu.memory_space<vmem>>, vector<8x128xbf16>
    tpu.vector_store %arg10[%c16, %c0_5], %2 {strides = array<i32>} : memref<24x128xbf16, #tpu.memory_space<vmem>>, vector<8x128xbf16>,
    %c0_6 = arith.constant 0 : index
    %c0_7 = arith.constant 0 : index
    %4 = vector.load %arg10[%c0_6, %c0_7] : memref<24x128xbf16, #tpu.memory_space<vmem>>, vector<24x128xbf16>
    %c0_8 = arith.constant 0 : index
    %c0_9 = arith.constant 0 : index
    %5 = vector.load %arg3[%c0_8, %c0_9] : memref<128x24xbf16, #tpu.memory_space<vmem>>, vector<128x24xbf16>
    %cst = arith.constant dense<0.000000e+00> : vector<128x128xf32>
    %6 = tpu.matmul %5, %4, %cst {dimension_numbers = #tpu.dot_dimension_numbers<[1], [0], [0], [1], [0, 0, 1, 1], [], []>} : vector<128x24xbf16>, vector<24x128xbf16>, vector<128x128xf32> -> vector<128x128xf32>
    %c0_10 = arith.constant 0 : index
    %c0_11 = arith.constant 0 : index
    %7 = vector.load %arg4[%c0_10, %c0_11] : memref<128x1xf32, #tpu.memory_space<vmem>>, vector<128x1xf32>
    %8 = vector.broadcast %7 : vector<128x1xf32> to vector<128x128xf32>
    %9 = arith.addf %6, %8 : vector<128x128xf32>
    %cst_12 = arith.constant 0.000000e+00 : f32
    %10 = vector.broadcast %cst_12 : f32 to vector<128x128xf32>
    %11 = arith.maximumf %9, %10 : vector<128x128xf32>
    %c0_13 = arith.constant 0 : index
    %c0_14 = arith.constant 0 : index
    %12 = vector.load %arg5[%c0_13, %c0_14] : memref<128x128xbf16, #tpu.memory_space<vmem>>, vector<128x128xbf16>
    %13 = arith.truncf %11 : vector<128x128xf32> to vector<128x128xbf16>
    %cst_15 = arith.constant dense<0.000000e+00> : vector<128x128xf32>
    %14 = tpu.matmul %12, %13, %cst_15 {dimension_numbers = #tpu.dot_dimension_numbers<[1], [0], [0], [1], [0, 0, 1, 1], [], []>} : vector<128x128xbf16>, vector<128x128xbf16>, vector<128x128xf32> -> vector<128x128xf32>
    %c0_16 = arith.constant 0 : index
    %c0_17 = arith.constant 0 : index
    %15 = vector.load %arg6[%c0_16, %c0_17] : memref<128x1xf32, #tpu.memory_space<vmem>>, vector<128x1xf32>
    %16 = vector.broadcast %15 : vector<128x1xf32> to vector<128x128xf32>
    %17 = arith.addf %14, %16 : vector<128x128xf32>
    %cst_18 = arith.constant 0.000000e+00 : f32
    %18 = vector.broadcast %cst_18 : f32 to vector<128x128xf32>
    %19 = arith.maximumf %17, %18 : vector<128x128xf32>
    %c0_19 = arith.constant 0 : index
    %c0_20 = arith.constant 0 : index
    %20 = vector.load %arg7[%c0_19, %c0_20] : memref<128x1xf32, #tpu.memory_space<vmem>>, vector<128x1xf32>
    %21 = vector.broadcast %20 : vector<128x1xf32> to vector<128x128xf32>
    %22 = arith.mulf %19, %21 : vector<128x128xf32>
    %cst_21 = arith.constant dense<0.000000e+00> : vector<128xf32>
    %23 = vector.multi_reduction <add>, %22, %cst_21 [0] : vector<128x128xf32> to vector<128xf32>
    %24 = vector.shape_cast %23 : vector<128xf32> to vector<1x128xf32>
    %c0_22 = arith.constant 0 : index
    %c0_23 = arith.constant 0 : index
    %25 = vector.load %arg8[%c0_22, %c0_23] : memref<1x1xf32, #tpu.memory_space<vmem>>, vector<1x1xf32>
    %26 = vector.broadcast %25 : vector<1x1xf32> to vector<1x128xf32>
    %27 = arith.addf %24, %26 : vector<1x128xf32>
    %c0_24 = arith.constant 0 : index
    %c0_25 = arith.constant 0 : index
    %28 = vector.load %arg9[%c0_24, %c0_25] : memref<1x128xf32, #tpu.memory_space<vmem>>, vector<1x128xf32>
    tpu.vector_store %arg9[%c0_24, %c0_25], %27 {strides = array<i32>} : memref<1x128xf32, #tpu.memory_space<vmem>>, vector<1x128xf32>,
    return
  }
  func.func @transform_0(%arg0: i32) -> (i32, i32) {
    %c0_i32 = arith.constant 0 : i32
    %c0_i32_0 = arith.constant 0 : i32
    return %c0_i32, %arg0 : i32, i32
  }
  func.func @transform_1(%arg0: i32) -> (i32, i32) {
    %c0_i32 = arith.constant 0 : i32
    %c0_i32_0 = arith.constant 0 : i32
    return %c0_i32, %arg0 : i32, i32
  }
  func.func @transform_2(%arg0: i32) -> (i32, i32) {
    %c0_i32 = arith.constant 0 : i32
    %c0_i32_0 = arith.constant 0 : i32
    %c0_i32_1 = arith.constant 0 : i32
    return %c0_i32, %c0_i32_0 : i32, i32
  }
  func.func @transform_3(%arg0: i32) -> (i32, i32) {
    %c0_i32 = arith.constant 0 : i32
    %c0_i32_0 = arith.constant 0 : i32
    %c0_i32_1 = arith.constant 0 : i32
    return %c0_i32, %c0_i32_0 : i32, i32
  }
  func.func @transform_4(%arg0: i32) -> (i32, i32) {
    %c0_i32 = arith.constant 0 : i32
    %c0_i32_0 = arith.constant 0 : i32
    %c0_i32_1 = arith.constant 0 : i32
    return %c0_i32, %c0_i32_0 : i32, i32
  }
  func.func @transform_5(%arg0: i32) -> (i32, i32) {
    %c0_i32 = arith.constant 0 : i32
    %c0_i32_0 = arith.constant 0 : i32
    %c0_i32_1 = arith.constant 0 : i32
    return %c0_i32, %c0_i32_0 : i32, i32
  }
  func.func @transform_6(%arg0: i32) -> (i32, i32) {
    %c0_i32 = arith.constant 0 : i32
    %c0_i32_0 = arith.constant 0 : i32
    %c0_i32_1 = arith.constant 0 : i32
    return %c0_i32, %c0_i32_0 : i32, i32
  }
  func.func @transform_7(%arg0: i32) -> (i32, i32) {
    %c0_i32 = arith.constant 0 : i32
    %c0_i32_0 = arith.constant 0 : i32
    %c0_i32_1 = arith.constant 0 : i32
    return %c0_i32, %c0_i32_0 : i32, i32
  }
  func.func @transform_8(%arg0: i32) -> (i32, i32) {
    %c0_i32 = arith.constant 0 : i32
    %c0_i32_0 = arith.constant 0 : i32
    return %c0_i32, %arg0 : i32, i32
  }
}

</mosaic_0001>

<bundles_post_ra>
// kernel: tpu_custom_call.1
= control target key start
LH: loop header
LB: loop body
LE: loop exit
PB: predicated region body
PF: predicated region fallthrough
CT: control target
= control target key end

     0   :  { %s1680_s0 = inlined_call_operand.vmem [shape: bf16[16,384], index: 0, kind: input, shape index: {}]   ;;  %s1681_s1 = inlined_call_operand.vmem [shape: bf16[8,384], index: 1, kind: input, shape index: {}]   ;;  %s1682_s2 = inlined_call_operand.vmem [shape: bf16[128,24], index: 2, kind: input, shape index: {}]   ;;  %s1683_s3 = inlined_call_operand.vmem [shape: f32[128,1], index: 3, kind: input, shape index: {}]   ;;  %s1684_s4 = inlined_call_operand.vmem [shape: bf16[128,128], index: 4, kind: input, shape index: {}]   ;;  %s1685_s5 = inlined_call_operand.vmem [shape: f32[128,1], index: 5, kind: input, shape index: {}]   ;;  %s1686_s6 = inlined_call_operand.vmem [shape: f32[128,1], index: 6, kind: input, shape index: {}]   ;;  %s1687_s7 = inlined_call_operand.<no memory space> [shape: f32[1,1], index: 7, kind: input, shape index: {}]   ;;  %s1688_s8 = inlined_call_operand.hbm [shape: f32[1,384], index: 8, kind: output, shape index: {}]  }
   0x1   :  { %v13_v0 = vstv %s1687_s7 }
   0x2   :  { %14 = vst [vmem:[#allocation3] sm:$0x1] %v13_v0 }
   0x3   :  { %15 = vsyncpa [#allocation6], 0 }
   0x4   :  { %17 = vsyncpa [#allocation6 + $0x1], 0  ;;  %s1364_s29 = smov 0   ;;  %s1366_s30 = smov 0  }
   0x5   :  { %s1368_s9 = smov 0   ;;  %s1370_s10 = smov 0  }
   0x6 LB: > { %s1385_s7 = sadd.s32 4294967295, %s1313_s10   ;;  %s1095_s11 = sadd.s32 4294967294, %s1313_s10   ;;  %s1313_s10 = sphi %s1370_s10, %s1694_s10   ;;  %s1309_s9 = sphi %s1368_s9, %s1693_s9   ;;  %s1305_s30 = sphi %s1366_s30, %s1692_s30   ;;  %s1301_s29 = sphi %s1364_s29, %s1691_s29  }
   0x7   : > { %s1389_s12 = sadd.s32 1, %s1313_s10   ;;  %s30_s13 = sadd.s32 1, %s1309_s9 }
   0x8   : > { %s27_s14 = ssub.s32 %s1313_s10, %s1389_s12  ;;  %p37_p0 = scmp.ne.s32.totalorder %s1309_s9, %s1305_s30 }
   0x9   : > { %p28_p1 = scmp.eq.s32.totalorder %s27_s14, 0  ;;  %p38_p2 = scmp.eq.s32.totalorder %s1313_s10, 0 }
   0xa   : > { %p219_p3 = scmp.eq.s32.totalorder %s1385_s7, 2  ;;  %p224_p4 = scmp.ne.s32.totalorder %s1305_s30, %s1301_s29 }
   0xb   : > { %s1401_s15 = scalar_select %p28_p1, %s1309_s9, %s30_s13  }
   0xc   : > { %p39_p5 = por %p38_p2, %p37_p0  ;;  %p1403_p6 = por %p219_p3, %p37_p0 }
   0xd   : > { %p225_p7 = scmp.eq.s32.totalorder %s1095_s11, 2  ;;  %p1097_p9 = scmp.ge.s32.totalorder %s1313_s10, 3 }
   0xf   : > { %p1407_p8 = por %p225_p7, %p224_p4  ;;  %259 = sbr.rel (%p1097_p9) target bundleno = 26 (0x1a), region = 40 }
  0x14   : > { %262 = sbr.rel (!%p39_p5) target bundleno = 26 (0x1a), region = 44  ;;  %s264_s18 = sand.u32 (%p39_p5), 1, %s1309_s9  }
  0x15   : > { %s1099_s19 = sshll.u32 (%p39_p5), %s1313_s10, 2  ;;  %s1098_s20 = sshll.u32 (%p39_p5), %s264_s18, 3 }
  0x16   : > { %s268_s23 = scalar_lea.vmem (%p39_p5), %s1680_s0, %s1099_s19  ;;  %s266_s24 = scalar_lea.vmem (%p39_p5), [#allocation4], %s1098_s20 }
  0x17   : > { %v285_v1 = vld [vmem:[%s268_s23] sm:$0xf] (%p39_p5)  ;;  %v287_v2 = vld [vmem:[%s268_s23 + $0xc] sm:$0xf] (%p39_p5) }
  0x18   : > { %286 = vst [vmem:[%s266_s24] sm:$0xf] (%p39_p5), %v285_v1 }
  0x19   : > { %288 = vst [vmem:[%s266_s24 + $0x4] sm:$0xf] %v287_v2 }
  0x1a PF: > { %p1100_p10 = scmp.ge.s32.totalorder %s1313_s10, 1  ;;  %p322_p11 = scmp.lt.s32.totalorder %s1313_s10, 4 }
  0x1c   : > { %p323_p12 = pnand %p1100_p10, %p322_p11 }
  0x1d   : > { %p365_p13 = scmp.lt.s32.totalorder (!%p323_p12), %s1385_s7, 2  ;;  %s1430_s14 = sand.u32 (!%p323_p12), 1, %s1305_s30  }
  0x1e   : > { %326 = sbr.rel (%p323_p12) target bundleno = 506 (0x1fa), region = 89  ;;  %s1101_s19 = sshll.u32 (!%p323_p12), %s1430_s14, 3 }
  0x1f   : > { %s331_s24 = scalar_lea.vmem (!%p323_p12), [#allocation4], %s1101_s19  ;;  %s1018_s19 = scalar_lea.hbm (!%p323_p12), %s1688_s8, %s1385_s7 }
  0x20   : > { %s1022_s22 = sshll.u32 (!%p323_p12), %s1018_s19, 4  ;;  %s1271_s27 = scalar_lea.hbm (!%p323_p12), %s1688_s8, 3  ;;  %s1023_s22 = int_to_ptr.hbm [resolvable:$true] %s1022_s22 }
  0x23   : > { %v409_v3 = vld [vmem:[%s1683_s3 + $0x70] sm:$0xff]  ;;  %v407_v4 = vld [vmem:[%s1683_s3 + $0x60] sm:$0xff]  ;;  %v1315_v6 = vmov 0   ;;  %s366_s18 = scalar_select %p365_p13, %s1385_s7, 2  ;;  %v408_v9 = vld [vmem:[%s1683_s3 + $0x68] sm:$0xff]  ;;  %vm565_vm0 = vcmask 1043456  }
  0x24   : > { %v405_v5 = vld [vmem:[%s1683_s3 + $0x50] sm:$0xff]  ;;  %1250 = vset.pattern.permute.xlu2 %v1315_v6  ;;  %1249 = vset.pattern.permute.xlu1 %v1315_v6  ;;  %v410_v10 = vld [vmem:[%s1683_s3 + $0x78] sm:$0xff]  ;;  %v404_v13 = vld [vmem:[%s1683_s3 + $0x48] sm:$0xff]  ;;  %vm540_vm1 = vcmask 195584  }
  0x25   : > { %1248 = vset.pattern.permute.xlu0 %v1315_v6  ;;  %473 = vperm.xlu1 %1249, %v407_v4   ;;  %s1102_s20 = sshll.u32 %s366_s18, 2  ;;  %v370_v7 = vld [vmem:[%s331_s24] sm:$0xff]   ;;  %v403_v15 = vld [vmem:[%s1683_s3 + $0x40] sm:$0xff]  ;;  %v1000_v6 = vld [vmem:[#allocation3] sm:$0x1]  ;;  %s1265_s24 = sshra.s32 %s1023_s22, 4  ;;  %s1266_s24 = int_to_ptr.hbm [resolvable:$true] %s1265_s24 }
  0x26   : > { %483 = vperm.xlu0 %1248, %v409_v3   ;;  %463 = vperm.xlu2 %1250, %v405_v5   ;;  %s368_s23 = scalar_lea.vmem %s1681_s1, %s1102_s20  ;;  %372 = vst [vmem:[#allocation2] sm:$0xff] %v370_v7   ;;  %v406_v11 = vld [vmem:[%s1683_s3 + $0x58] sm:$0xff]  ;;  %v401_v16 = vld [vmem:[%s1683_s3 + $0x30] sm:$0xff]  ;;  %v399_v21 = vld [vmem:[%s1683_s3 + $0x20] sm:$0xff]  ;;  %s364_s20 = scalar_lea.vmem [#allocation5], %s1430_s14 }
  0x27   : > { %v374_v8 = vld [vmem:[%s368_s23] sm:$0xf]  ;;  %v402_v20 = vld [vmem:[%s1683_s3 + $0x38] sm:$0xff]  ;;  %v400_v22 = vld [vmem:[%s1683_s3 + $0x28] sm:$0xff]  ;;  %s1020_s21 = sshll.u32 %s364_s20, 4  ;;  %s1010_s23 = scalar_lea.sflag [#allocation6], %s1430_s14  ;;  %s1021_s21 = int_to_ptr.vmem [resolvable:$true] %s1020_s21 }
  0x28   : > { %375 = vst [vmem:[#allocation2 + $0x8] sm:$0xf] %v374_v8  ;;  %v1182_v23 = vld [vmem:[%s1682_s2] sm:$0xff]  ;;  %v1187_v24 = vld [vmem:[%s1682_s2 + $0x28] sm:$0xff]  ;;  %v398_v25 = vld [vmem:[%s1683_s3 + $0x18] sm:$0xff]  ;;  %s1267_s25 = scalar_lea.hbm %s1266_s24, 1  ;;  %p1272_p3 = scmp.lt.s32.totalorder %s1266_s24, %s1688_s8 }
  0x29   : > { %v397_v26 = vld [vmem:[%s1683_s3 + $0x10] sm:$0xff]  ;;  %v395_v27 = vld [vmem:[%s1683_s3] sm:$0xff]  ;;  %v396_v29 = vld [vmem:[%s1683_s3 + $0x8] sm:$0xff]  ;;  %p1268_p0 = scmp.ne.s32.totalorder %s1266_s24, %s1267_s25  ;;  %p1273_p4 = scmp.lt.s32.totalorder %s1271_s27, %s1267_s25 }
  0x2a   : > { %v658_v28 = vld [vmem:[%s1685_s5] sm:$0xff]  ;;  %v659_v30 = vld [vmem:[%s1685_s5 + $0x8] sm:$0xff]  ;;  %v1188_v32 = vld [vmem:[%s1682_s2 + $0x30] sm:$0xff] }
  0x2b   : > { %v1183_v31 = vld [vmem:[%s1682_s2 + $0x8] sm:$0xff]  ;;  %v661_v33 = vld [vmem:[%s1685_s5 + $0x18] sm:$0xff]  ;;  %v660_v34 = vld [vmem:[%s1685_s5 + $0x10] sm:$0xff]  ;;  %p1269_p1 = pnand %p1268_p0, %p1403_p6  ;;  %p1274_p5 = por %p1273_p4, %p1272_p3 }
  0x2c   : > { %v662_v35 = vld [vmem:[%s1685_s5 + $0x20] sm:$0xff]  ;;  %v664_v36 = vld [vmem:[%s1685_s5 + $0x30] sm:$0xff]  ;;  %v663_v37 = vld [vmem:[%s1685_s5 + $0x28] sm:$0xff] }
  0x2d   : > { %478 = vperm.xlu1 %1249, %v408_v9   ;;  %v1181_v19 = vld [vmem:[#allocation2] sm:$0xff]  ;;  %v665_v38 = vld [vmem:[%s1685_s5 + $0x38] sm:$0xff]  ;;  %v1184_v39 = vld [vmem:[%s1682_s2 + $0x10] sm:$0xff]  ;;  %p1270_p2 = pneg %p1269_p1 }
  0x2e   : > { %488 = vperm.xlu0 %1248, %v410_v10   ;;  %468 = vperm.xlu2 %1250, %v406_v11   ;;  %v1189_v40 = vld [vmem:[%s1682_s2 + $0x38] sm:$0xff]  ;;  %v667_v41 = vld [vmem:[%s1685_s5 + $0x48] sm:$0xff]  ;;  %v666_v42 = vld [vmem:[%s1685_s5 + $0x40] sm:$0xff] }
  0x2f   : > { %v378_v12 = vld [vmem:[#allocation2 + $0x8] sm:$0xf]  ;;  %v668_v43 = vld [vmem:[%s1685_s5 + $0x50] sm:$0xff]  ;;  %v670_v44 = vld [vmem:[%s1685_s5 + $0x60] sm:$0xff]  ;;  %p1275_p7 = pnand %p1274_p5, %p1270_p2 }
  0x30   : > { %v536_v14 = vunpack.c.l.b16 %v378_v12  ;;  %v669_v45 = vld [vmem:[%s1685_s5 + $0x58] sm:$0xff]  ;;  %v671_v46 = vld [vmem:[%s1685_s5 + $0x68] sm:$0xff]  ;;  %v672_v49 = vld [vmem:[%s1685_s5 + $0x70] sm:$0xff] }
  0x31   : > { %v1185_v47 = vld [vmem:[%s1682_s2 + $0x18] sm:$0xff]  ;;  %v867_v50 = vld [vmem:[%s1686_s6] sm:$0xff]  ;;  %v869_v51 = vld [vmem:[%s1686_s6 + $0x10] sm:$0xff] }
  0x32   : > { %v538_v17 = vpack.c.b16 %v536_v14, %v536_v14  ;;  %v673_v48 = vld [vmem:[%s1685_s5 + $0x78] sm:$0xff]  ;;  %v868_v52 = vld [vmem:[%s1686_s6 + $0x8] sm:$0xff]  ;;  %v1186_v54 = vld [vmem:[%s1682_s2 + $0x20] sm:$0xff] }
  0x33   : > { %v870_v53 = vld [vmem:[%s1686_s6 + $0x18] sm:$0xff]  ;;  %v872_v55 = vld [vmem:[%s1686_s6 + $0x28] sm:$0xff]  ;;  %v871_v56 = vld [vmem:[%s1686_s6 + $0x20] sm:$0xff] }
  0x34   : > { %v567_v18 = vsel %vm565_vm0, %v538_v17, 0  ;;  %v873_v57 = vld [vmem:[%s1686_s6 + $0x30] sm:$0xff]  ;;  %v875_v58 = vld [vmem:[%s1686_s6 + $0x40] sm:$0xff]  ;;  %v874_v59 = vld [vmem:[%s1686_s6 + $0x38] sm:$0xff] }
  0x35   : > { %458 = vperm.xlu1 %1249, %v404_v13   ;;  %575 = vmatpush.bf16.msra.mxu0 %v567_v18  ;;  %v876_v60 = vld [vmem:[%s1686_s6 + $0x48] sm:$0xff]  ;;  %v878_v61 = vld [vmem:[%s1686_s6 + $0x58] sm:$0xff]  ;;  %v877_v62 = vld [vmem:[%s1686_s6 + $0x50] sm:$0xff] }
  0x36   : > { %453 = vperm.xlu0 %1248, %v403_v15   ;;  %443 = vperm.xlu2 %1250, %v401_v16   ;;  %v879_v63 = vld [vmem:[%s1686_s6 + $0x60] sm:$0xff]  ;;  %v881_v2 = vld [vmem:[%s1686_s6 + $0x70] sm:$0xff]  ;;  %v880_v3 = vld [vmem:[%s1686_s6 + $0x68] sm:$0xff] }
  0x37   : > { %1198 = vmatpush.bf16.msra.mxu3 %v567_v18  ;;  %v882_v4 = vld [vmem:[%s1686_s6 + $0x78] sm:$0xff] }
  0x39   : > { %576 = vmatpush.bf16.msra.mxu0 %v1181_v19 }
  0x3b   : > { %1199 = vmatpush.bf16.msra.mxu3 %v1181_v19 }
  0x3c   : > { %1139 = vmatmul.msk.bf16.vlgmr.msra.gmra.mxu0 %vm540_vm1, %v1182_v23 }
  0x3d   : > { %433 = vperm.xlu1 %1249, %v399_v21  }
  0x3e   : > { %448 = vperm.xlu0 %1248, %v402_v20   ;;  %438 = vperm.xlu2 %1250, %v400_v22  }
  0x3f   : > { %1144 = vmatmul.msk.bf16.vlgmr.msra.gmra.mxu3 %vm540_vm1, %v1187_v24 }
  0x45   : > { %428 = vperm.xlu1 %1249, %v398_v25  }
  0x46   : > { %423 = vperm.xlu0 %1248, %v397_v26   ;;  %413 = vperm.xlu2 %1250, %v395_v27  }
  0x4c   : > { %1140 = vmatmul.msk.bf16.gmra.mxu0 %vm540_vm1, %v1183_v31 }
  0x4d   : > { %676 = vperm.xlu1 %1249, %v658_v28  }
  0x4e   : > { %418 = vperm.xlu0 %1248, %v396_v29   ;;  %681 = vperm.xlu2 %1250, %v659_v30  }
  0x4f   : > { %1145 = vmatmul.msk.bf16.gmra.mxu3 %vm540_vm1, %v1188_v32 }
  0x55   : > { %691 = vperm.xlu1 %1249, %v661_v33  }
  0x56   : > { %686 = vperm.xlu0 %1248, %v660_v34   ;;  %696 = vperm.xlu2 %1250, %v662_v35  }
  0x5c   : > { %1141 = vmatmul.msk.bf16.gmra.mxu0 %vm540_vm1, %v1184_v39 }
  0x5d   : > { %706 = vperm.xlu1 %1249, %v664_v36  }
  0x5e   : > { %701 = vperm.xlu0 %1248, %v663_v37   ;;  %711 = vperm.xlu2 %1250, %v665_v38  }
  0x5f   : > { %1146 = vmatmul.msk.bf16.gmra.mxu3 %vm540_vm1, %v1189_v40 }
  0x65   : > { %721 = vperm.xlu1 %1249, %v667_v41  }
  0x66   : > { %716 = vperm.xlu0 %1248, %v666_v42   ;;  %726 = vperm.xlu2 %1250, %v668_v43  }
  0x6c   : > { %1142 = vmatmul.msk.bf16.gmra.mxu0 %vm540_vm1, %v1185_v47 }
  0x6d   : > { %736 = vperm.xlu1 %1249, %v670_v44  }
  0x6e   : > { %731 = vperm.xlu0 %1248, %v669_v45   ;;  %741 = vperm.xlu2 %1250, %v671_v46  }
  0x75   : > { %751 = vperm.xlu1 %1249, %v673_v48  }
  0x76   : > { %746 = vperm.xlu0 %1248, %v672_v49   ;;  %885 = vperm.xlu2 %1250, %v867_v50  }
  0x7c   : > { %1143 = vmatmul.msk.bf16.gmra.mxu0 %vm540_vm1, %v1186_v54 }
  0x7d   : > { %895 = vperm.xlu1 %1249, %v869_v51  }
  0x7e   : > { %890 = vperm.xlu0 %1248, %v868_v52   ;;  %900 = vperm.xlu2 %1250, %v870_v53  }
  0x80   : > { %v464_v1 = vpop.permute.xlu2 %463 }
  0x85   : > { %910 = vperm.xlu1 %1249, %v872_v55  }
  0x86   : > { %905 = vperm.xlu0 %1248, %v871_v56   ;;  %915 = vperm.xlu2 %1250, %v873_v57  }
  0x88   : > { %v469_v7 = vpop.permute.xlu2 %468 }
  0x8d   : > { %925 = vperm.xlu1 %1249, %v875_v58  }
  0x8e   : > { %920 = vperm.xlu0 %1248, %v874_v59   ;;  %930 = vperm.xlu2 %1250, %v876_v60  }
  0x90   : > { %v444_v9 = vpop.permute.xlu2 %443 }
  0x95   : > { %940 = vperm.xlu1 %1249, %v878_v61  }
  0x96   : > { %935 = vperm.xlu0 %1248, %v877_v62   ;;  %945 = vperm.xlu2 %1250, %v879_v63  }
  0x97   : > { %v474_v29 = vpop.permute.xlu1 %473 }
  0x98   : > { %v484_v0 = vpop.permute.xlu0 %483  ;;  %v439_v11 = vpop.permute.xlu2 %438 }
  0x9d   : > { %955 = vperm.xlu1 %1249, %v881_v2  }
  0x9e   : > { %950 = vperm.xlu0 %1248, %v880_v3   ;;  %960 = vperm.xlu2 %1250, %v882_v4  }
  0x9f   : > { %v479_v33 = vpop.permute.xlu1 %478 }
  0xa0   : > { %v489_v5 = vpop.permute.xlu0 %488  ;;  %v414_v14 = vpop.permute.xlu2 %413 }
  0xa6   : > { %1003 = vperm.xlu0 %1248, %v1000_v6  }
  0xa7   : > { %v459_v51 = vpop.permute.xlu1 %458 }
  0xa8   : > { %v454_v8 = vpop.permute.xlu0 %453 }
  0xaf   : > { %v434_v53 = vpop.permute.xlu1 %433 }
  0xb0   : > { %v449_v10 = vpop.permute.xlu0 %448 }
  0xb7   : > { %v429_v2 = vpop.permute.xlu1 %428 }
  0xb8   : > { %v1604_v12 = vpop.permute.xlu0 %423 }
  0xb9   : > { %v578_v13 = vpop.f32.mrf.mxu0 }
  0xba   : > { %v579_v16 = vadd.f32 %v578_v13, %v414_v14  ;;  %v1190_v13 = vld [vmem:[%s1684_s4] sm:$0xff] }
  0xbb   : > { %v1194_v14 = vld [vmem:[%s1684_s4 + $0x20] sm:$0xff] }
  0xbc   : > { %v618_v20 = vmax.f32 %v579_v16, 0.0  ;;  %v1192_v16 = vld [vmem:[%s1684_s4 + $0x10] sm:$0xff] }
  0xc0   : > { %v419_v17 = vpop.permute.xlu0 %418 }
  0xc1   : > { %v580_v18 = vpop.f32.mrf.mxu0 }
  0xc2   : > { %v603_v15 = vpop.f32.mrf.mxu3  ;;  %v581_v19 = vadd.f32 %v580_v18, %v419_v17  ;;  %v1196_v17 = vld [vmem:[%s1684_s4 + $0x30] sm:$0xff]  ;;  %v1193_v18 = vld [vmem:[%s1684_s4 + $0x18] sm:$0xff] }
  0xc3   : > { %v604_v41 = vadd.f32 %v603_v15, %v464_v1  ;;  %v1195_v15 = vld [vmem:[%s1684_s4 + $0x28] sm:$0xff] }
  0xc4   : > { %v619_v21 = vmax.f32 %v581_v19, 0.0  ;;  %v1197_v19 = vld [vmem:[%s1684_s4 + $0x38] sm:$0xff] }
  0xc5   : > { %v628_v46 = vmax.f32 %v604_v41, 0.0 }
  0xc6   : > { %v1606_v22 = vpack.c.bf16 %v619_v21, %v618_v20  ;;  %v677_v20 = vpop.permute.xlu1 %676  ;;  %v682_v21 = vpop.permute.xlu2 %681 }
  0xc9   : > { %v583_v24 = vpop.f32.mrf.mxu0 }
  0xca   : > { %v605_v23 = vpop.f32.mrf.mxu3  ;;  %v584_v6 = vadd.f32 %v583_v24, %v1604_v12  ;;  %v1191_v12 = vld [vmem:[%s1684_s4 + $0x8] sm:$0xff] }
  0xcb   : > { %v606_v42 = vadd.f32 %v605_v23, %v469_v7 }
  0xcd   : > { %v629_v47 = vmax.f32 %v606_v42, 0.0 }
  0xce   : > { %v692_v23 = vpop.permute.xlu1 %691  ;;  %v697_v24 = vpop.permute.xlu2 %696 }
  0xcf   : > { %v655_v50 = vpack.c.bf16 %v629_v47, %v628_v46 }
  0xd1   : > { %v585_v26 = vpop.f32.mrf.mxu0 }
  0xd2   : > { %v608_v25 = vpop.f32.mrf.mxu3  ;;  %v586_v3 = vadd.f32 %v585_v26, %v429_v2 }
  0xd3   : > { %v609_v35 = vadd.f32 %v608_v25, %v474_v29 }
  0xd5   : > { %v630_v43 = vmax.f32 %v609_v35, 0.0 }
  0xd6   : > { %v707_v26 = vpop.permute.xlu1 %706 }
  0xd9   : > { %v588_v28 = vpop.f32.mrf.mxu0 }
  0xda   : > { %v610_v27 = vpop.f32.mrf.mxu3 }
  0xdb   : > { %v611_v36 = vadd.f32 %v610_v27, %v479_v33  ;;  %v712_v27 = vpop.permute.xlu2 %711 }
  0xdd   : > { %v631_v44 = vmax.f32 %v611_v36, 0.0 }
  0xdf   : > { %v656_v48 = vpack.c.bf16 %v631_v44, %v630_v43 }
  0xe1   : > { %v590_v31 = vpop.f32.mrf.mxu0 }
  0xe2   : > { %v613_v30 = vpop.f32.mrf.mxu3  ;;  %v591_v61 = vadd.f32 %v590_v31, %v439_v11 }
  0xe3   : > { %v614_v32 = vadd.f32 %v613_v30, %v484_v0  ;;  %v589_v0 = vadd.f32 %v588_v28, %v434_v53  ;;  %v722_v30 = vpop.permute.xlu1 %721  ;;  %v727_v31 = vpop.permute.xlu2 %726 }
  0xe4   : > { %v623_v4 = vmax.f32 %v591_v61, 0.0 }
  0xe5   : > { %v632_v37 = vmax.f32 %v614_v32, 0.0  ;;  %v622_v7 = vmax.f32 %v589_v0, 0.0 }
  0xe9   : > { %v593_v39 = vpop.f32.mrf.mxu0 }
  0xea   : > { %v615_v34 = vpop.f32.mrf.mxu3  ;;  %v594_v58 = vadd.f32 %v593_v39, %v444_v9  ;;  %v652_v9 = vpack.c.bf16 %v623_v4, %v622_v7 }
  0xeb   : > { %v616_v38 = vadd.f32 %v615_v34, %v489_v5  ;;  %v1635_v35 = vpop.permute.xlu1 %736 }
  0xec   : > { %v624_v1 = vmax.f32 %v594_v58, 0.0 }
  0xed   : > { %v633_v40 = vmax.f32 %v616_v38, 0.0 }
  0xef   : > { %v657_v45 = vpack.c.bf16 %v633_v40, %v632_v37  ;;  %v1637_v37 = vpop.permute.xlu2 %741 }
  0xf1   : > { %802 = vmatpush.bf16.msra.mxu1 %v657_v45  ;;  %1200 = vmatpush.bf16.msra.mxu2 %v657_v45  ;;  %v595_v49 = vpop.f32.mrf.mxu0 }
  0xf2   : > { %v596_v56 = vadd.f32 %v595_v49, %v449_v10  ;;  %v620_v10 = vmax.f32 %v584_v6, 0.0 }
  0xf3   : > { %v1641_v41 = vpop.permute.xlu1 %751 }
  0xf4   : > { %v625_v62 = vmax.f32 %v596_v56, 0.0 }
  0xf5   : > { %803 = vmatpush.bf16.msra.mxu1 %v656_v48  ;;  %1201 = vmatpush.bf16.msra.mxu2 %v656_v48 }
  0xf6   : > { %v653_v5 = vpack.c.bf16 %v625_v62, %v624_v1 }
  0xf7   : > { %v886_v43 = vpop.permute.xlu2 %885 }
  0xf9   : > { %804 = vmatpush.bf16.msra.mxu1 %v655_v50  ;;  %1202 = vmatpush.bf16.msra.mxu2 %v655_v50  ;;  %v598_v52 = vpop.f32.mrf.mxu0 }
  0xfa   : > { %v599_v54 = vadd.f32 %v598_v52, %v454_v8  ;;  %v621_v8 = vmax.f32 %v586_v3, 0.0 }
  0xfb   : > { %v896_v47 = vpop.permute.xlu1 %895 }
  0xfc   : > { %v626_v59 = vmax.f32 %v599_v54, 0.0  ;;  %v651_v11 = vpack.c.bf16 %v621_v8, %v620_v10 }
  0xff   : > { %v901_v48 = vpop.permute.xlu2 %900 }
 0x101   : > { %v600_v55 = vpop.f32.mrf.mxu0 }
 0x102   : > { %v601_v57 = vadd.f32 %v600_v55, %v459_v51 }
 0x104   : > { %v627_v60 = vmax.f32 %v601_v57, 0.0  ;;  %v911_v57 = vpop.permute.xlu1 %910 }
 0x106   : > { %v654_v63 = vpack.c.bf16 %v627_v60, %v626_v59 }
 0x107   : > { %v916_v58 = vpop.permute.xlu2 %915 }
 0x108   : > { %805 = vmatpush.bf16.msra.mxu1 %v654_v63  ;;  %1203 = vmatpush.bf16.msra.mxu2 %v654_v63 }
 0x10c   : > { %806 = vmatpush.bf16.msra.mxu1 %v653_v5  ;;  %1204 = vmatpush.bf16.msra.mxu2 %v653_v5 }
 0x110   : > { %807 = vmatpush.bf16.msra.mxu1 %v652_v9  ;;  %1205 = vmatpush.bf16.msra.mxu2 %v652_v9 }
 0x114   : > { %808 = vmatpush.bf16.msra.mxu1 %v651_v11  ;;  %1206 = vmatpush.bf16.msra.mxu2 %v651_v11 }
 0x118   : > { %809 = vmatpush.bf16.msra.mxu1 %v1606_v22  ;;  %1207 = vmatpush.bf16.msra.mxu2 %v1606_v22  ;;  %v687_v22 = vpop.permute.xlu0 %686 }
 0x11b   : > { %810 = vmatmul.bf16.vlgmr.msra.gmra.mxu1 %v1190_v13  ;;  %830 = vmatmul.bf16.vlgmr.msra.gmra.mxu2 %v1194_v14 }
 0x120   : > { %v702_v25 = vpop.permute.xlu0 %701 }
 0x128   : > { %v717_v29 = vpop.permute.xlu0 %716 }
 0x12b   : > { %815 = vmatmul.bf16.gmra.mxu1 %v1191_v12  ;;  %835 = vmatmul.bf16.gmra.mxu2 %v1195_v15  ;;  %v926_v12 = vpop.permute.xlu1 %925  ;;  %v931_v15 = vpop.permute.xlu2 %930 }
 0x130   : > { %v732_v34 = vpop.permute.xlu0 %731 }
 0x138   : > { %v1639_v39 = vpop.permute.xlu0 %746 }
 0x13b   : > { %820 = vmatmul.bf16.gmra.mxu1 %v1192_v16  ;;  %840 = vmatmul.bf16.gmra.mxu2 %v1196_v17 }
 0x140   : > { %v891_v45 = vpop.permute.xlu0 %890 }
 0x148   : > { %v906_v54 = vpop.permute.xlu0 %905 }
 0x14b   : > { %825 = vmatmul.bf16.gmra.mxu1 %v1193_v18  ;;  %845 = vmatmul.bf16.gmra.mxu2 %v1197_v19 }
 0x150   : > { %v921_v10 = vpop.permute.xlu0 %920 }
 0x198   : > { %v811_v28 = vpop.f32.mrf.mxu1 }
 0x199   : > { %v812_v52 = vadd.f32 %v811_v28, %v677_v20 }
 0x19b   : > { %v851_v59 = vmax.f32 %v812_v52, 0.0  ;;  %v946_v52 = vpop.permute.xlu2 %945 }
 0x19d   : > { %v963_v3 = vmul.f32 %v886_v43, %v851_v59 }
 0x19e   : > { %v831_v32 = vpop.f32.mrf.mxu2 }
 0x19f   : > { %v832_v16 = vadd.f32 %v831_v32, %v717_v29 }
 0x1a0   : > { %v813_v33 = vpop.f32.mrf.mxu1 }
 0x1a1   : > { %v814_v50 = vadd.f32 %v813_v33, %v682_v21 }
 0x1a3   : > { %v852_v55 = vmax.f32 %v814_v50, 0.0  ;;  %v941_v50 = vpop.permute.xlu1 %940 }
 0x1a5   : > { %v964_v63 = vmul.f32 %v891_v45, %v852_v55 }
 0x1a6   : > { %v833_v36 = vpop.f32.mrf.mxu2 }
 0x1a7   : > { %v979_v7 = vadd.f32 %v964_v63, %v963_v3  ;;  %v834_v21 = vadd.f32 %v833_v36, %v722_v30 }
 0x1a8   : > { %v816_v38 = vpop.f32.mrf.mxu1 }
 0x1a9   : > { %v817_v53 = vadd.f32 %v816_v38, %v687_v22  ;;  %v860_v38 = vmax.f32 %v834_v21, 0.0 }
 0x1ab   : > { %v853_v60 = vmax.f32 %v817_v53, 0.0 }
 0x1ad   : > { %v965_v4 = vmul.f32 %v896_v47, %v853_v60 }
 0x1ae   : > { %v836_v40 = vpop.f32.mrf.mxu2 }
 0x1af   : > { %v980_v11 = vadd.f32 %v979_v7, %v965_v4 }
 0x1b0   : > { %v818_v42 = vpop.f32.mrf.mxu1 }
 0x1b1   : > { %v819_v56 = vadd.f32 %v818_v42, %v692_v23 }
 0x1b3   : > { %v854_v0 = vmax.f32 %v819_v56, 0.0 }
 0x1b5   : > { %v966_v8 = vmul.f32 %v901_v48, %v854_v0 }
 0x1b6   : > { %v838_v44 = vpop.f32.mrf.mxu2 }
 0x1b7   : > { %v981_v17 = vadd.f32 %v980_v11, %v966_v8  ;;  %v839_v42 = vadd.f32 %v838_v44, %v732_v34 }
 0x1b8   : > { %v821_v46 = vpop.f32.mrf.mxu1 }
 0x1b9   : > { %v822_v61 = vadd.f32 %v821_v46, %v697_v24  ;;  %v936_v46 = vpop.permute.xlu0 %935  ;;  %v862_v30 = vmax.f32 %v839_v42, 0.0 }
 0x1bb   : > { %v855_v5 = vmax.f32 %v822_v61, 0.0 }
 0x1bd   : > { %v967_v13 = vmul.f32 %v906_v54, %v855_v5  ;;  %v974_v54 = vmul.f32 %v941_v50, %v862_v30 }
 0x1be   : > { %v841_v49 = vpop.f32.mrf.mxu2 }
 0x1bf   : > { %v982_v22 = vadd.f32 %v981_v17, %v967_v13  ;;  %v842_v29 = vadd.f32 %v841_v49, %v1635_v35 }
 0x1c0   : > { %v823_v51 = vpop.f32.mrf.mxu1 }
 0x1c1   : > { %v824_v1 = vadd.f32 %v823_v51, %v702_v25  ;;  %v859_v25 = vmax.f32 %v832_v16, 0.0  ;;  %v972_v51 = vmul.f32 %v931_v15, %v860_v38  ;;  %v863_v53 = vmax.f32 %v842_v29, 0.0  ;;  %v951_v59 = vpop.permute.xlu0 %950 }
 0x1c3   : > { %v856_v9 = vmax.f32 %v824_v1, 0.0  ;;  %v971_v47 = vmul.f32 %v926_v12, %v859_v25  ;;  %v975_v35 = vmul.f32 %v946_v52, %v863_v53  ;;  %v961_v1 = vpop.permute.xlu2 %960 }
 0x1c5   : > { %v968_v18 = vmul.f32 %v911_v57, %v856_v9 }
 0x1c6   : > { %v843_v62 = vpop.f32.mrf.mxu2 }
 0x1c7   : > { %v983_v28 = vadd.f32 %v982_v22, %v968_v18  ;;  %v844_v36 = vadd.f32 %v843_v62, %v1637_v37  ;;  %v956_v62 = vpop.permute.xlu1 %955 }
 0x1c8   : > { %v826_v2 = vpop.f32.mrf.mxu1 }
 0x1c9   : > { %v827_v6 = vadd.f32 %v826_v2, %v707_v26  ;;  %v837_v26 = vadd.f32 %v836_v40, %v727_v31  ;;  %v864_v55 = vmax.f32 %v844_v36, 0.0  ;;  %v1004_v7 = vpop.permute.xlu0 %1003 }
 0x1ca   : > { %v1006_v9 = vperm.slane %v1004_v7, 0 }
 0x1cb   : > { %v857_v14 = vmax.f32 %v827_v6, 0.0  ;;  %v861_v48 = vmax.f32 %v837_v26, 0.0  ;;  %v976_v60 = vmul.f32 %v951_v59, %v864_v55 }
 0x1cd   : > { %v969_v23 = vmul.f32 %v916_v58, %v857_v14  ;;  %v973_v40 = vmul.f32 %v936_v46, %v861_v48 }
 0x1ce   : > { %v846_v19 = vpop.f32.mrf.mxu2 }
 0x1cf   : > { %v984_v43 = vadd.f32 %v983_v28, %v969_v23  ;;  %v847_v34 = vadd.f32 %v846_v19, %v1639_v39 }
 0x1d0   : > { %v828_v20 = vpop.f32.mrf.mxu1 }
 0x1d1   : > { %v829_v24 = vadd.f32 %v828_v20, %v712_v27  ;;  %v865_v49 = vmax.f32 %v847_v34, 0.0 }
 0x1d3   : > { %v858_v33 = vmax.f32 %v829_v24, 0.0  ;;  %v977_v63 = vmul.f32 %v956_v62, %v865_v49 }
 0x1d5   : > { %v970_v45 = vmul.f32 %v921_v10, %v858_v33 }
 0x1d6   : > { %v848_v31 = vpop.f32.mrf.mxu2 }
 0x1d7   : > { %v985_v32 = vadd.f32 %v984_v43, %v970_v45  ;;  %v849_v57 = vadd.f32 %v848_v31, %v1641_v41 }
 0x1d9   : > { %v986_v27 = vadd.f32 %v985_v32, %v971_v47  ;;  %v866_v37 = vmax.f32 %v849_v57, 0.0 }
 0x1db   : > { %v987_v44 = vadd.f32 %v986_v27, %v972_v51  ;;  %v978_v39 = vmul.f32 %v961_v1, %v866_v37 }
 0x1dd   : > { %v988_v56 = vadd.f32 %v987_v44, %v973_v40 }
 0x1df   : > { %v989_v58 = vadd.f32 %v988_v56, %v974_v54 }
 0x1e1   : > { %v990_v61 = vadd.f32 %v989_v58, %v975_v35 }
 0x1e3   : > { %v991_v0 = vadd.f32 %v990_v61, %v976_v60 }
 0x1e5   : > { %v992_v2 = vadd.f32 %v991_v0, %v977_v63 }
 0x1e7   : > { %v993_v3 = vadd.f32 %v992_v2, %v978_v39 }
 0x1e9   : > { %v994_v4 = vrot.slane %v993_v3, 4 }
 0x1eb   : > { %v995_v5 = vadd.f32 %v994_v4, %v993_v3 }
 0x1ed   : > { %v996_v41 = vrot.slane %v995_v5, 2 }
 0x1ef   : > { %v997_v6 = vadd.f32 %v996_v41, %v995_v5 }
 0x1f1   : > { %v998_v8 = vrot.slane %v997_v6, 1 }
 0x1f3   : > { %v999_v10 = vadd.f32 %v998_v8, %v997_v6 }
 0x1f5   : > { %v1007_v11 = vadd.f32 %v1006_v9, %v999_v10 }
 0x1f7   : > { %1008 = vst [vmem:[%s364_s20] sm:$0x1] %v1007_v11 }
 0x1f8   : > { %1278 = shalt.err (!%p1275_p7)
}
 0x1f9   : > { %1208 = dma.vmem_to_hbm [thread:$0]  (%p1403_p6), %s1021_s21, 16, %s1023_s22, %s1010_s23  }
 0x1fa PF: > { %p1214_p9 = scmp.ge.s32.totalorder %s1313_s10, 2  ;;  %s1034_s14 = sand.u32 1, %s1301_s29  }
 0x1fb   : > { %s1035_s13 = scalar_lea.sflag [#allocation6], %s1034_s14 }
 0x1fc   : > { %p1211_p10 = pnand %p1214_p9, %p1407_p8 }
 0x1fe   : > { %p1212_p11 = pneg %p1211_p10 }
 0x200   : > { %1296 = dma.done.wait (%p1212_p11), %s1035_s13, 16  }
 0x201   : > { %1298 = vsyncadd (%p1212_p11), %s1035_s13, 4294967280  ;;  %p20_p12 = scmp.ge.s32.totalorder %s1389_s12, 5   ;;  %s1691_s29 = smov %s1305_s30 }
 0x202   : > { %s1692_s30 = smov %s1309_s9  ;;  %s1693_s9 = smov %s1401_s15 }
 0x203   : > { %s1694_s10 = smov %s1389_s12  ;;  %22 = sbr.rel (!%p20_p12) target bundleno = 6 (0x6), region = 136 }
 0x208   :  { %1040 = vsyncpa [#allocation6], 1 }
 0x209   :  { %1042 = vsyncpa [#allocation6 + $0x1], 1 }

</bundles_post_ra>
